<compile_context>
chip_gen: v7x
topology: tpu7x:2x2x1
jax: 0.10.0
libtpu: 0.0.40
codegen_flags: <defaults>
</compile_context>

<pallas_src>
import jax
import jax.numpy as jnp
from jax import lax
from jax.experimental import pallas as pl
from jax.experimental.pallas import tpu as pltpu


def _policy_kernel(x_ref, w_ref, b_ref, mu_ref, ls_ref):
    # x: (TB, nx) f32 ; w: (2*nu, nx) f32 (PyTorch nn.Linear layout) ; b: (1, 2*nu)
    x = x_ref[...]
    w = w_ref[...]
    b = b_ref[...]
    # Contract the feature axis of x against the feature axis of w
    # (== x @ w.T), done natively on the MXU -- no wrapper-side transpose.
    y = lax.dot_general(
        x, w,
        dimension_numbers=(((1,), (1,)), ((), ())),
        preferred_element_type=jnp.float32,
    ) + b                                    # (TB, 2*nu), f32 accumulate + bias (f32 epilogue)
    nu = mu_ref.shape[-1]
    mu_ref[...] = y[:, :nu].astype(mu_ref.dtype)
    ls_ref[...] = y[:, nu:].astype(ls_ref.dtype)
    # TODO(synk): fuse downstream policy math here (exp(log_std), tanh squash,
    # sampling) if/when callers need it -- the module itself stops at (mu, log_std).


def dummy_policy_forward(x, weight, bias, *, block_b=512):
    """DummyPolicy.forward: fc(x).chunk(2, dim=-1).

    x: (B, nx) f32; weight: (2*nu, nx) f32 (PyTorch layout); bias: (2*nu,) f32.
    Returns (mu, log_std), each (B, nu) f32.
    """
    B, nx = x.shape
    two_nu, nx_w = weight.shape
    assert nx_w == nx and two_nu % 2 == 0
    nu = two_nu // 2
    b2d = bias.reshape(1, two_nu)            # keep 2D for TPU-friendly layout

    out_shape = (jax.ShapeDtypeStruct((B, nu), jnp.float32),
                 jax.ShapeDtypeStruct((B, nu), jnp.float32))

    if B <= block_b:
        # Small batch: single-shot launch, no grid / per-step overhead.
        mu, log_std = pl.pallas_call(
            _policy_kernel,
            out_shape=out_shape,
            in_specs=[pl.BlockSpec(memory_space=pltpu.MemorySpace.VMEM)] * 3,
            out_specs=(pl.BlockSpec(memory_space=pltpu.MemorySpace.VMEM),) * 2,
        )(x, weight, b2d)
        return mu, log_std

    # Large batch: stream x in (block_b, nx) tiles; weight & bias stay
    # VMEM-resident (constant index_map -> DMA'd once). Batch axis is
    # "parallel" so v7x's two TensorCores can split the grid; harmless on
    # v5e/v6e (single TC).
    grid = (pl.cdiv(B, block_b),)
    mu, log_std = pl.pallas_call(
        _policy_kernel,
        out_shape=out_shape,
        grid=grid,
        in_specs=[
            pl.BlockSpec((block_b, nx), lambda i: (i, 0)),
            pl.BlockSpec((two_nu, nx), lambda i: (0, 0)),
            pl.BlockSpec((1, two_nu), lambda i: (0, 0)),
        ],
        out_specs=(
            pl.BlockSpec((block_b, nu), lambda i: (i, 0)),
            pl.BlockSpec((block_b, nu), lambda i: (i, 0)),
        ),
        compiler_params=pltpu.CompilerParams(
            dimension_semantics=("parallel",)),
    )(x, weight, b2d)
    return mu, log_std


if __name__ == "__main__":
    # Small shapes consistent with the module: nx=32 state dims, nu=16 action dims, batch=8.
    B, nx, nu = 8, 32, 16

    key = jax.random.PRNGKey(0)
    kx, kw, kb = jax.random.split(key, 3)

    x = jax.random.normal(kx, (B, nx), dtype=jnp.float32)
    # Deterministic parameter init (mimics nn.Linear's uniform(-1/sqrt(nx), 1/sqrt(nx))).
    bound = 1.0 / jnp.sqrt(jnp.float32(nx))
    weight = jax.random.uniform(kw, (2 * nu, nx), dtype=jnp.float32,
                                minval=-bound, maxval=bound)
    bias = jax.random.uniform(kb, (2 * nu,), dtype=jnp.float32,
                              minval=-bound, maxval=bound)

    # --- single-block (no-grid) path ---
    mu, log_std = dummy_policy_forward(x, weight, bias)
    jax.block_until_ready((mu, log_std))

    ref = x @ weight.T + bias
    ref_mu, ref_log_std = ref[:, :nu], ref[:, nu:]
    assert mu.shape == (B, nu) and log_std.shape == (B, nu)
    assert jnp.allclose(mu, ref_mu, atol=1e-5)
    assert jnp.allclose(log_std, ref_log_std, atol=1e-5)

    # --- batch-tiled (grid over B) path, exercised with a small tile ---
    B2 = 32
    x2 = jax.random.normal(jax.random.PRNGKey(1), (B2, nx), dtype=jnp.float32)
    mu2, log_std2 = dummy_policy_forward(x2, weight, bias, block_b=8)
    jax.block_until_ready((mu2, log_std2))

    ref2 = x2 @ weight.T + bias
    assert jnp.allclose(mu2, ref2[:, :nu], atol=1e-5)
    assert jnp.allclose(log_std2, ref2[:, nu:], atol=1e-5)

    print("KERNEL_OK")
</pallas_src>

<mosaic_0001>
module attributes {stable_mosaic.version = 11 : i64} {
  func.func @_policy_kernel(%arg0: memref<8x32xf32, #tpu.memory_space<vmem>>, %arg1: memref<32x32xf32, #tpu.memory_space<vmem>>, %arg2: memref<1x32xf32, #tpu.memory_space<vmem>>, %arg3: memref<8x16xf32, #tpu.memory_space<vmem>>, %arg4: memref<8x16xf32, #tpu.memory_space<vmem>>) attributes {dimension_semantics = [], scalar_prefetch = 0 : i64, scratch_operands = 0 : i64, tpu.core_type = #tpu.core_type<tc>} {
    %c0 = arith.constant 0 : index
    %c0_0 = arith.constant 0 : index
    %0 = vector.load %arg0[%c0, %c0_0] : memref<8x32xf32, #tpu.memory_space<vmem>>, vector<8x32xf32>
    %c0_1 = arith.constant 0 : index
    %c0_2 = arith.constant 0 : index
    %1 = vector.load %arg1[%c0_1, %c0_2] : memref<32x32xf32, #tpu.memory_space<vmem>>, vector<32x32xf32>
    %c0_3 = arith.constant 0 : index
    %c0_4 = arith.constant 0 : index
    %2 = vector.load %arg2[%c0_3, %c0_4] : memref<1x32xf32, #tpu.memory_space<vmem>>, vector<1x32xf32>
    %cst = arith.constant dense<0.000000e+00> : vector<8x32xf32>
    %3 = tpu.matmul %0, %1, %cst {dimension_numbers = #tpu.dot_dimension_numbers<[1], [1], [0], [0], [0, 0, 1, 0], [], []>} : vector<8x32xf32>, vector<32x32xf32>, vector<8x32xf32> -> vector<8x32xf32>
    %4 = vector.broadcast %2 : vector<1x32xf32> to vector<8x32xf32>
    %5 = arith.addf %3, %4 : vector<8x32xf32>
    %6 = vector.extract_strided_slice %5 {offsets = [0, 0], sizes = [8, 16], strides = [1, 1]} : vector<8x32xf32> to vector<8x16xf32>
    %c0_5 = arith.constant 0 : index
    %c0_6 = arith.constant 0 : index
    %7 = vector.load %arg3[%c0_5, %c0_6] : memref<8x16xf32, #tpu.memory_space<vmem>>, vector<8x16xf32>
    tpu.vector_store %arg3[%c0_5, %c0_6], %6 {strides = array<i32>} : memref<8x16xf32, #tpu.memory_space<vmem>>, vector<8x16xf32>,
    %8 = vector.extract_strided_slice %5 {offsets = [0, 16], sizes = [8, 16], strides = [1, 1]} : vector<8x32xf32> to vector<8x16xf32>
    %c0_7 = arith.constant 0 : index
    %c0_8 = arith.constant 0 : index
    %9 = vector.load %arg4[%c0_7, %c0_8] : memref<8x16xf32, #tpu.memory_space<vmem>>, vector<8x16xf32>
    tpu.vector_store %arg4[%c0_7, %c0_8], %8 {strides = array<i32>} : memref<8x16xf32, #tpu.memory_space<vmem>>, vector<8x16xf32>,
    return
  }
}

</mosaic_0001>

<bundles_post_ra>
// kernel: tpu_custom_call.1
= control target key start
LH: loop header
LB: loop body
LE: loop exit
PB: predicated region body
PF: predicated region fallthrough
CT: control target
= control target key end

     0   :  { %10 = vsyncpa [#allocation3], 0  ;;  %s410_s0 = inlined_call_operand.hbm [shape: f32[8,32], index: 0, kind: input, shape index: {}]   ;;  %s411_s1 = inlined_call_operand.hbm [shape: f32[32,32], index: 1, kind: input, shape index: {}]   ;;  %s412_s2 = inlined_call_operand.vmem [shape: f32[1,32], index: 2, kind: input, shape index: {}]   ;;  %s413_s3 = inlined_call_operand.hbm [shape: f32[8,16], index: 3, kind: output, shape index: {0}]   ;;  %s414_s4 = inlined_call_operand.hbm [shape: f32[8,16], index: 4, kind: output, shape index: {1}]  }
   0x1   :  { %11 = vsyncpa [#allocation6], 0 }
   0x2   :  { %12 = vsyncpa [#allocation4], 0 }
   0x3   :  { %13 = vsyncpa [#allocation9], 0  ;;  %s315_s15 = smov [#allocation2]   ;;  %s316_s17 = smov [#allocation5]  }
   0x4   :  { %s20_s16 = sshll.u32 %s315_s15, 4  ;;  %s29_s18 = sshll.u32 %s316_s17, 4  ;;  %s21_s16 = int_to_ptr.vmem [resolvable:$true] %s20_s16  ;;  %s350_s18 = int_to_ptr.vmem [resolvable:$true] %s29_s18 }
   0x5   :  { %s219_s21 = scalar_lea.hbm %s410_s0, 128 }
   0x6   :  { %p220_p0 = scmp.ne.s32.totalorder %s410_s0, %s219_s21  ;;  %p223_p1 = scmp.lt.u32.totalorder %s219_s21, %s410_s0 }
   0x8   :  { %p225_p2 = pnand %p223_p1, %p220_p0 }
   0xa   :  { %228 = shalt.err (!%p225_p2)
}
   0xb   :  { %s229_s26 = scalar_lea.vmem %s21_s16, 128  ;;  %p234_p4 = scmp.lt.s32.totalorder %s21_s16, %s21_s16 }
   0xc   :  { %p230_p3 = scmp.ne.s32.totalorder %s21_s16, %s229_s26  ;;  %p235_p5 = scmp.lt.s32.totalorder %s229_s26, %s229_s26 }
   0xe   :  { %p236_p6 = por %p235_p5, %p234_p4 }
  0x10   :  { %p237_p7 = pnand %p236_p6, %p230_p3 }
  0x12   :  { %240 = shalt.err (!%p237_p7)
}
  0x13   :  { %23 = dma.hbm_to_vmem [thread:$0]  %s410_s0, 128, %s21_s16, [#allocation3]  }
  0x14   :  { %s241_s5 = scalar_lea.hbm %s411_s1, 512 }
  0x15   :  { %p242_p8 = scmp.ne.s32.totalorder %s411_s1, %s241_s5  ;;  %p245_p9 = scmp.lt.u32.totalorder %s241_s5, %s411_s1 }
  0x17   :  { %p247_p10 = pnand %p245_p9, %p242_p8 }
  0x19   :  { %250 = shalt.err (!%p247_p10)
}
  0x1a   :  { %s251_s10 = scalar_lea.vmem %s350_s18, 512  ;;  %p256_p12 = scmp.lt.s32.totalorder %s350_s18, %s350_s18 }
  0x1b   :  { %p252_p11 = scmp.ne.s32.totalorder %s350_s18, %s251_s10  ;;  %p257_p13 = scmp.lt.s32.totalorder %s251_s10, %s251_s10 }
  0x1d   :  { %p258_p0 = por %p257_p13, %p256_p12 }
  0x1f   :  { %p259_p1 = pnand %p258_p0, %p252_p11 }
  0x21   :  { %262 = shalt.err (!%p259_p1)
}
  0x22   :  { %s317_s0 = smov 128   ;;  %s318_s11 = smov 8  }
  0x23   :  { %35 = dma.hbm_to_vmem [thread:$0]  %s411_s1, 512, %s350_s18, [#allocation6], %s317_s0, %s317_s0, %s318_s11  }
  0x24   :  { %307 = dma.done.wait [#allocation3], 128  }
  0x25   :  { %308 = vsyncadd [#allocation3], 4294967168 }
  0x26   :  { %309 = dma.done.wait [#allocation6], 512  }
  0x27   :  { %310 = vsyncadd [#allocation6], 4294966784  ;;  %v319_v0 = vmov 0.0|0.0   ;;  %vm320_vm0 = vmmov 0   ;;  %v321_v1 = vmov 0.0   ;;  %vm56_vm1 = vcmask 261120  }
  0x28   :  { %201 = vmatprep.subr.bf16.mxu0 %v319_v0  ;;  %198 = vmatprep.mubr.msk.f32.mxu0 %vm320_vm0, %v321_v1  ;;  %v45_v2 = vld [vmem:[#allocation5] sm:$0xff]  ;;  %v46_v3 = vld [vmem:[#allocation5 + $0x8] sm:$0xff]  ;;  %vm203_vm2 = vmpackc.low %vm56_vm1, %vm56_vm1  ;;  %s322_s15 = smov [#allocation7]   ;;  %vm142_vm3 = vcmask 130048   ;;  %s323_s17 = smov 112  }
  0x29   :  { %v202_v4 = vpack.c.bf16 %v46_v3, %v45_v2  ;;  %v47_v5 = vld [vmem:[#allocation5 + $0x10] sm:$0xff]  ;;  %v48_v6 = vld [vmem:[#allocation5 + $0x18] sm:$0xff]  ;;  %s155_s16 = sshll.u32 %s322_s15, 4  ;;  %s156_s16 = int_to_ptr.vmem [resolvable:$true] %s155_s16 }
  0x2a   :  { %v206_v7 = vpack.c.bf16 %v48_v6, %v47_v5  ;;  %v44_v8 = vld [vmem:[#allocation2] sm:$0xff]  ;;  %s263_s18 = scalar_lea.vmem %s156_s16, 128  ;;  %p268_p3 = scmp.lt.s32.totalorder %s156_s16, %s156_s16 }
  0x2b   :  { %204 = vmatpush3.bf16.xpose.msk.msra.mxu0 %vm203_vm2, %v202_v4  ;;  %v179_v9 = vld [vmem:[%s412_s2] ss:$0 sm:$0xff]  ;;  %p264_p2 = scmp.ne.s32.totalorder %s156_s16, %s263_s18  ;;  %p269_p4 = scmp.lt.s32.totalorder %s263_s18, %s263_s18 }
  0x2c   :  { %205 = vmatprep.subr.bf16.mxu0 %v319_v0 }
  0x2d   :  { %p270_p5 = por %p269_p4, %p268_p3 }
  0x2f   :  { %p271_p6 = pnand %p270_p5, %p264_p2 }
  0x33   :  { %208 = vmatpush3.bf16.xpose.msk.msra.mxu0 %vm203_vm2, %v206_v7 }
  0x3a   :  { %199 = vmatmul.mubr.msk.f32.vlgmr.msra.gmra.mrb[0].mxu0 %vm56_vm1, %v44_v8 }
 0x10d   :  { %v138_v10 = vpop.f32.mrb[0].mxu0 }
 0x10e   :  { %v139_v11 = vadd.f32 %v179_v9, %v138_v10  ;;  %v200_v12 = vpop.f32.mrb[1].mxu0 }
 0x110   :  { %145 = vrot.lane.b32.xlu0 %v139_v11, %s323_s17  ;;  %143 = vst.msk [vmem:[#allocation7] sm:$0xff] %vm142_vm3, %v139_v11 }
 0x111   :  { %274 = shalt.err (!%p271_p6)
}
 0x112   :  { %s275_s20 = scalar_lea.hbm %s413_s3, 128 }
 0x113   :  { %p276_p7 = scmp.ne.s32.totalorder %s413_s3, %s275_s20  ;;  %p279_p8 = scmp.lt.u32.totalorder %s275_s20, %s413_s3 }
 0x115   :  { %p281_p9 = pnand %p279_p8, %p276_p7 }
 0x117   :  { %284 = shalt.err (!%p281_p9)
}
 0x118   :  { %158 = dma.vmem_to_hbm [thread:$0]  %s156_s16, 128, %s413_s3, [#allocation4]  }
 0x119   :  { %s324_s27 = smov [#allocation8]  }
 0x11a   :  { %s165_s28 = sshll.u32 %s324_s27, 4  ;;  %s166_s28 = int_to_ptr.vmem [resolvable:$true] %s165_s28 }
 0x11b   :  { %s285_s29 = scalar_lea.vmem %s166_s28, 128  ;;  %p290_p11 = scmp.lt.s32.totalorder %s166_s28, %s166_s28 }
 0x11c   :  { %p286_p10 = scmp.ne.s32.totalorder %s166_s28, %s285_s29  ;;  %p291_p12 = scmp.lt.s32.totalorder %s285_s29, %s285_s29 }
 0x11e   :  { %p292_p13 = por %p291_p12, %p290_p11 }
 0x120   :  { %p293_p0 = pnand %p292_p13, %p286_p10 }
 0x182   :  { %v146_v13 = vpop.permute.xlu0 %145 }
 0x183   :  { %148 = vst.msk [vmem:[#allocation8] sm:$0xff] %vm142_vm3, %v146_v13 }
 0x184   :  { %296 = shalt.err (!%p293_p0)
}
 0x185   :  { %s297_s6 = scalar_lea.hbm %s414_s4, 128 }
 0x186   :  { %p298_p1 = scmp.ne.s32.totalorder %s414_s4, %s297_s6  ;;  %p301_p2 = scmp.lt.u32.totalorder %s297_s6, %s414_s4 }
 0x188   :  { %p303_p3 = pnand %p301_p2, %p298_p1 }
 0x18a   :  { %306 = shalt.err (!%p303_p3)
}
 0x18b   :  { %168 = dma.vmem_to_hbm [thread:$0]  %s166_s28, 128, %s414_s4, [#allocation9]  }
 0x18c   :  { %311 = dma.done.wait [#allocation4], 128  }
 0x18d   :  { %312 = vsyncadd [#allocation4], 4294967168 }
 0x18e   :  { %313 = dma.done.wait [#allocation9], 128  }
 0x18f   :  { %314 = vsyncadd [#allocation9], 4294967168 }
 0x190   :  { %175 = vsyncpa [#allocation3], 1 }
 0x191   :  { %176 = vsyncpa [#allocation6], 1 }
 0x192   :  { %177 = vsyncpa [#allocation4], 1 }
 0x193   :  { %178 = vsyncpa [#allocation9], 1 }

</bundles_post_ra>
